<compile_context>
chip_gen: v7x
topology: tpu7x:2x2x1
jax: 0.10.0
libtpu: 0.0.40
codegen_flags: <defaults>
</compile_context>

<pallas_src>
import functools

import jax
import jax.numpy as jnp
from jax.experimental import pallas as pl
from jax.experimental.pallas import tpu as pltpu


def _soft_target_kernel(s_ref, t_ref, out_ref, *, inv_temperature):
    """One batch tile -> lane-dense partial KL sums of shape (1, 1, C)."""
    s = s_ref[...].astype(jnp.float32) * inv_temperature
    t = t_ref[...].astype(jnp.float32) * inv_temperature

    # Stabilized softmax pieces over the class (lane) axis.
    s_sh = s - jnp.max(s, axis=-1, keepdims=True)
    t_sh = t - jnp.max(t, axis=-1, keepdims=True)

    # TODO(synk): on v6e/v7x these two full-tile exps could run in bf16 (EUP is
    # bf16-capable there) if the caller tolerates ~1e-3 error; kept f32 here.
    e_s = jnp.exp(s_sh)                                  # EUP, full tile
    e_t = jnp.exp(t_sh)                                  # EUP, full tile
    z_s = jnp.sum(e_s, axis=-1, keepdims=True)           # (bt, 1)
    z_t = jnp.sum(e_t, axis=-1, keepdims=True)           # (bt, 1)

    # Teacher probabilities without a third full-tile exp.
    inv_z_t = pl.reciprocal(z_t, approx=False)            # (bt, 1)
    p_t = e_t * inv_z_t                                    # (bt, C)

    # logp_t - logp_s = (t_sh - s_sh) + log(z_s / z_t); reuse the reciprocal so
    # the single-slot EUP path sees one log per row instead of two.
    row_const = jnp.log(z_s * inv_z_t)                     # (bt, 1)

    summand = p_t * (t_sh - s_sh + row_const)              # (bt, C)

    # Sublane-only partial reduce; lane reduce + batchmean*T^2 done in wrapper.
    partial = jnp.sum(summand, axis=0, keepdims=True)      # (1, C)
    out_ref[...] = partial.reshape(out_ref.shape)          # (1, 1, C)


_SUBLANE = {4: 8, 2: 16, 1: 32}


def _vmem_capacity_bytes():
    """Physical VMEM per TensorCore; conservative fallback if query fails."""
    try:
        return int(pltpu.get_tpu_info().vmem_capacity_bytes)
    except Exception:
        return 64 << 20  # v7x-sized (smallest current generation)


def _choose_batch_tile(n, c, itemsize, *, target_steps=16,
                       f32_tile_budget_bytes=2 << 20):
    """Rows per grid step.

    Sublane-aligned, capped so a single (rows, C) f32 intermediate tile stays
    around <= 2 MiB (streaming saturates the HBM roofline already near 1 MiB),
    and capped so the grid keeps >= target_steps steps (pipeline depth and
    v7x two-TensorCore balance). Never larger than the padded batch.
    """
    sublane = _SUBLANE.get(itemsize, 8)
    rows_by_bytes = max(sublane, f32_tile_budget_bytes // (c * 4))
    rows_by_steps = max(sublane, pl.cdiv(n, target_steps))
    bt = min(rows_by_bytes, rows_by_steps)
    bt = max(sublane, (bt // sublane) * sublane)          # sublane-aligned
    bt = min(bt, pl.cdiv(n, sublane) * sublane)           # <= padded N
    return bt


def soft_target_loss(out_s, out_t, temperature, *, batch_tile=None):
    """SoftTarget KD loss. out_s, out_t: [N, C] logits. Returns scalar f32."""
    assert out_s.shape == out_t.shape and out_s.ndim == 2
    N, C = out_s.shape

    itemsize = max(jnp.dtype(out_s.dtype).itemsize, jnp.dtype(out_t.dtype).itemsize)
    if batch_tile is None:
        batch_tile = _choose_batch_tile(N, C, itemsize)

    # Pad the batch axis with identical zero rows up to a tile multiple: the KL
    # term between two identical (uniform) rows is exactly 0, so the summed
    # partials are unchanged; batchmean below divides by the ORIGINAL N.
    n_pad = pl.cdiv(N, batch_tile) * batch_tile
    if n_pad != N:
        pad = ((0, n_pad - N), (0, 0))
        out_s = jnp.pad(out_s, pad)
        out_t = jnp.pad(out_t, pad)
    num_tiles = n_pad // batch_tile

    # Generation-aware scoped-VMEM limit: ~half of physical VMEM
    # (=> ~32 MiB on v7x's 64 MiB, ~64 MiB on v5e/v6e's 128 MiB).
    # Per-step footprint = 2 inputs x 2 pipeline buffers x (tile*itemsize)
    # + ~6 live f32 intermediate tiles; the <=2 MiB-of-f32-per-tile cap in
    # _choose_batch_tile keeps this well under the limit on every generation.
    vmem_limit = min(64 << 20, _vmem_capacity_bytes() // 2)

    # TODO(synk): when C << 128 lane occupancy is only C/128; packing several
    # rows per lane-row in the wrapper would recover VPU/EUP/XLU throughput.
    # TODO(synk): tile the class axis with an online logsumexp if a single
    # (batch_tile, C) f32 tile ever exceeds the per-tile budget (huge C).

    kernel = functools.partial(
        _soft_target_kernel,
        inv_temperature=1.0 / float(temperature),
    )

    partials = pl.pallas_call(
        kernel,
        out_shape=jax.ShapeDtypeStruct((num_tiles, 1, C), jnp.float32),
        grid_spec=pltpu.PrefetchScalarGridSpec(
            num_scalar_prefetch=0,
            grid=(num_tiles,),
            in_specs=[
                pl.BlockSpec((batch_tile, C), lambda i: (i, 0)),
                pl.BlockSpec((batch_tile, C), lambda i: (i, 0)),
            ],
            # Lane-dense, per-tile output block: no cross-step accumulation,
            # so the grid axis can be "parallel" (megacore on v7x).
            out_specs=pl.BlockSpec((1, 1, C), lambda i: (i, 0, 0)),
        ),
        compiler_params=pltpu.CompilerParams(
            dimension_semantics=("parallel",),
            vmem_limit_bytes=vmem_limit,
        ),
    )(out_s, out_t)

    scale = (float(temperature) * float(temperature)) / float(N)
    return jnp.sum(partials, dtype=jnp.float32) * scale


def _reference(out_s, out_t, temperature):
    """Pure-JAX reference matching F.kl_div(..., reduction='batchmean') * T * T."""
    T = temperature
    logp_s = jax.nn.log_softmax(out_s / T, axis=1)
    logp_t = jax.nn.log_softmax(out_t / T, axis=1)
    p_t = jnp.exp(logp_t)
    kl = jnp.sum(p_t * (logp_t - logp_s)) / out_s.shape[0]
    return kl * T * T


if __name__ == "__main__":
    key = jax.random.PRNGKey(0)
    k1, k2 = jax.random.split(key)

    N, C = 16, 32          # small student/teacher logit shapes
    temperature = 4.0

    out_s = jax.random.normal(k1, (N, C), dtype=jnp.float32)
    out_t = jax.random.normal(k2, (N, C), dtype=jnp.float32)

    loss = soft_target_loss(out_s, out_t, temperature)
    loss = jax.block_until_ready(loss)

    ref = _reference(out_s, out_t, temperature)
    assert jnp.allclose(loss, ref, rtol=1e-5, atol=1e-5), (loss, ref)

    print("KERNEL_OK")
</pallas_src>

<mosaic_0001>
module attributes {stable_mosaic.version = 11 : i64} {
  func.func @_soft_target_kernel(%arg0: i32, %arg1: memref<8x32xf32, #tpu.memory_space<vmem>>, %arg2: memref<8x32xf32, #tpu.memory_space<vmem>>, %arg3: memref<1x1x32xf32, #tpu.memory_space<vmem>>) attributes {dimension_semantics = [#tpu.dimension_semantics<parallel>], iteration_bounds = array<i64: 2>, scalar_prefetch = 0 : i64, scratch_operands = 0 : i64, tpu.core_type = #tpu.core_type<tc>, window_params = [{transform_indices = @transform_0, window_bounds = array<i64: 8, 32>}, {transform_indices = @transform_1, window_bounds = array<i64: 8, 32>}, {transform_indices = @transform_2, window_bounds = array<i64: 1, 1, 32>}]} {
    %c0 = arith.constant 0 : index
    %c0_0 = arith.constant 0 : index
    %0 = vector.load %arg1[%c0, %c0_0] : memref<8x32xf32, #tpu.memory_space<vmem>>, vector<8x32xf32>
    %cst = arith.constant 2.500000e-01 : f32
    %1 = vector.broadcast %cst : f32 to vector<8x32xf32>
    %2 = arith.mulf %0, %1 : vector<8x32xf32>
    %c0_1 = arith.constant 0 : index
    %c0_2 = arith.constant 0 : index
    %3 = vector.load %arg2[%c0_1, %c0_2] : memref<8x32xf32, #tpu.memory_space<vmem>>, vector<8x32xf32>
    %cst_3 = arith.constant 2.500000e-01 : f32
    %4 = vector.broadcast %cst_3 : f32 to vector<8x32xf32>
    %5 = arith.mulf %3, %4 : vector<8x32xf32>
    %cst_4 = arith.constant dense<0xFF800000> : vector<8xf32>
    %6 = vector.multi_reduction <maximumf>, %2, %cst_4 [1] : vector<8x32xf32> to vector<8xf32>
    %7 = vector.shape_cast %6 : vector<8xf32> to vector<8x1xf32>
    %8 = vector.broadcast %7 : vector<8x1xf32> to vector<8x32xf32>
    %9 = arith.subf %2, %8 : vector<8x32xf32>
    %cst_5 = arith.constant dense<0xFF800000> : vector<8xf32>
    %10 = vector.multi_reduction <maximumf>, %5, %cst_5 [1] : vector<8x32xf32> to vector<8xf32>
    %11 = vector.shape_cast %10 : vector<8xf32> to vector<8x1xf32>
    %12 = vector.broadcast %11 : vector<8x1xf32> to vector<8x32xf32>
    %13 = arith.subf %5, %12 : vector<8x32xf32>
    %14 = math.exp %9 : vector<8x32xf32>
    %15 = math.exp %13 : vector<8x32xf32>
    %cst_6 = arith.constant dense<0.000000e+00> : vector<8xf32>
    %16 = vector.multi_reduction <add>, %14, %cst_6 [1] : vector<8x32xf32> to vector<8xf32>
    %17 = vector.shape_cast %16 : vector<8xf32> to vector<8x1xf32>
    %cst_7 = arith.constant dense<0.000000e+00> : vector<8xf32>
    %18 = vector.multi_reduction <add>, %15, %cst_7 [1] : vector<8x32xf32> to vector<8xf32>
    %19 = vector.shape_cast %18 : vector<8xf32> to vector<8x1xf32>
    %20 = tpu.reciprocal %19 : vector<8x1xf32> -> vector<8x1xf32>
    %21 = vector.broadcast %20 : vector<8x1xf32> to vector<8x32xf32>
    %22 = arith.mulf %15, %21 : vector<8x32xf32>
    %23 = arith.mulf %17, %20 : vector<8x1xf32>
    %24 = math.log %23 : vector<8x1xf32>
    %25 = arith.subf %13, %9 : vector<8x32xf32>
    %26 = vector.broadcast %24 : vector<8x1xf32> to vector<8x32xf32>
    %27 = arith.addf %25, %26 : vector<8x32xf32>
    %28 = arith.mulf %22, %27 : vector<8x32xf32>
    %cst_8 = arith.constant dense<0.000000e+00> : vector<32xf32>
    %29 = vector.multi_reduction <add>, %28, %cst_8 [0] : vector<8x32xf32> to vector<32xf32>
    %30 = vector.shape_cast %29 : vector<32xf32> to vector<1x32xf32>
    %31 = vector.shape_cast %30 : vector<1x32xf32> to vector<1x1x32xf32>
    %c0_9 = arith.constant 0 : index
    %c0_10 = arith.constant 0 : index
    %c0_11 = arith.constant 0 : index
    %32 = vector.load %arg3[%c0_9, %c0_10, %c0_11] : memref<1x1x32xf32, #tpu.memory_space<vmem>>, vector<1x1x32xf32>
    tpu.vector_store %arg3[%c0_9, %c0_10, %c0_11], %31 {strides = array<i32>} : memref<1x1x32xf32, #tpu.memory_space<vmem>>, vector<1x1x32xf32>,
    return
  }
  func.func @transform_0(%arg0: i32) -> (i32, i32) {
    %c0_i32 = arith.constant 0 : i32
    %c0_i32_0 = arith.constant 0 : i32
    return %arg0, %c0_i32 : i32, i32
  }
  func.func @transform_1(%arg0: i32) -> (i32, i32) {
    %c0_i32 = arith.constant 0 : i32
    %c0_i32_0 = arith.constant 0 : i32
    return %arg0, %c0_i32 : i32, i32
  }
  func.func @transform_2(%arg0: i32) -> (i32, i32, i32) {
    %c0_i32 = arith.constant 0 : i32
    %c0_i32_0 = arith.constant 0 : i32
    %c0_i32_1 = arith.constant 0 : i32
    return %arg0, %c0_i32, %c0_i32_0 : i32, i32, i32
  }
}

</mosaic_0001>

<bundles_post_ra>
// kernel: tpu_custom_call.1
= control target key start
LH: loop header
LB: loop body
LE: loop exit
PB: predicated region body
PF: predicated region fallthrough
CT: control target
= control target key end

     0   :  { %7 = vsyncpa [#allocation3], 0  ;;  %s774_s0 = inlined_call_operand.hbm [shape: f32[16,32], index: 0, kind: input, shape index: {}]   ;;  %s775_s1 = inlined_call_operand.hbm [shape: f32[16,32], index: 1, kind: input, shape index: {}]   ;;  %s776_s2 = inlined_call_operand.hbm [shape: f32[2,1,32], index: 2, kind: output, shape index: {}]  }
   0x1   :  { %9 = vsyncpa [#allocation3 + $0x1], 0 }
   0x2   :  { %10 = vsyncpa [#allocation6], 0 }
   0x3   :  { %12 = vsyncpa [#allocation6 + $0x1], 0 }
   0x4   :  { %13 = vsyncpa [#allocation4], 0 }
   0x5   :  { %15 = vsyncpa [#allocation4 + $0x1], 0  ;;  %s559_s9 = smov 0   ;;  %s561_s10 = smov 0  }
   0x6   :  { %s563_s11 = smov 0   ;;  %s565_s12 = smov 0  }
   0x7 LB: > { %s580_s13 = sadd.s32 4294967295, %s539_s12   ;;  %s337_s14 = sadd.s32 4294967294, %s539_s12   ;;  %s539_s12 = sphi %s565_s12, %s795_s12   ;;  %s535_s11 = sphi %s563_s11, %s794_s11   ;;  %s531_s10 = sphi %s561_s10, %s793_s10   ;;  %s527_s9 = sphi %s559_s9, %s792_s9  }
   0x8   : > { %s584_s15 = sadd.s32 1, %s539_s12   ;;  %s28_s16 = sadd.s32 1, %s535_s11 }
   0x9   : > { %s25_s17 = ssub.s32 %s539_s12, %s584_s15  ;;  %p35_p0 = scmp.ne.s32.totalorder %s535_s11, %s531_s10 }
   0xa   : > { %p26_p1 = scmp.eq.s32.totalorder %s25_s17, 0  ;;  %p36_p2 = scmp.eq.s32.totalorder %s539_s12, 0 }
   0xb   : > { %p41_p3 = scmp.ne.s32.totalorder %s531_s10, %s527_s9  ;;  %p42_p4 = scmp.eq.s32.totalorder %s580_s13, 0 }
   0xc   : > { %s596_s18 = scalar_select %p26_p1, %s535_s11, %s28_s16  }
   0xd   : > { %p598_p5 = por %p36_p2, %p35_p0  ;;  %p602_p6 = por %p42_p4, %p41_p3 }
   0xe   : > { %p91_p7 = scmp.eq.s32.totalorder %s580_s13, 1  ;;  %p97_p8 = scmp.eq.s32.totalorder %s337_s14, 1 }
   0xf   : > { %s780_s20 = scalar_select %p602_p6, 1, 0 }
  0x10   : > { %p367_p10 = scmp.lt.s32.totalorder %s539_s12, 2  ;;  %p609_p11 = por %p91_p7, %p35_p0 }
  0x11   : > { %p613_p12 = por %p97_p8, %p41_p3  ;;  %s618_s23 = sand.u32 1, %s535_s11  }
  0x12   : > { %s781_s21 = scalar_select %p609_p11, 1, 0 }
  0x13   : > { %s782_s22 = scalar_select %p613_p12, 1, 0 }
  0x14   : > { %s341_s24 = sshll.u32 %s539_s12, 7  ;;  %s340_s25 = sshll.u32 %s618_s23, 3 }
  0x15   : > { %s627_s28 = scalar_lea.hbm %s774_s0, %s341_s24  ;;  %s121_s29 = scalar_lea.vmem [#allocation2], %s340_s25 }
  0x16   : > { %s128_s30 = sshll.u32 %s121_s29, 4  ;;  %p633_p13 = pnand %p367_p10, %p598_p5  ;;  %s637_s30 = int_to_ptr.vmem [resolvable:$true] %s128_s30 }
  0x17   : > { %s118_s4 = scalar_lea.sflag [#allocation3], %s618_s23  ;;  %s409_s5 = scalar_lea.hbm %s627_s28, 128 }
  0x18   : > { %p410_p2 = scmp.ne.s32.totalorder %s627_s28, %s409_s5  ;;  %p411_p3 = pneg %p633_p13 }
  0x19   : > { %s414_s8 = scalar_lea.hbm %s774_s0, 256  ;;  %p415_p5 = scmp.lt.u32.totalorder %s627_s28, %s774_s0 }
  0x1a   : > { %p412_p4 = pnand %p411_p3, %p410_p2  ;;  %p416_p8 = scmp.lt.u32.totalorder %s414_s8, %s409_s5 }
  0x1b   : > { %p418_p9 = scmp.lt.u32.totalorder %s409_s5, %s627_s28 }
  0x1c   : > { %p413_p7 = pneg %p412_p4  ;;  %p417_p10 = por %p416_p8, %p415_p5 }
  0x1e   : > { %p419_p0 = por %p418_p9, %p417_p10 }
  0x20   : > { %p420_p1 = pnand %p419_p0, %p413_p7 }
  0x22   : > { %423 = shalt.err (!%p420_p1)
}
  0x23   : > { %s424_s17 = scalar_lea.vmem %s637_s30, 128  ;;  %s541_s19 = smov [#allocation2]  }
  0x24   : > { %p425_p2 = scmp.ne.s32.totalorder %s637_s30, %s424_s17  ;;  %s429_s26 = sshll.u32 %s541_s19, 4  ;;  %s430_s26 = int_to_ptr.vmem [resolvable:$false] %s429_s26 }
  0x25   : > { %s431_s27 = scalar_lea.vmem %s430_s26, 256  ;;  %p432_p11 = scmp.lt.s32.totalorder %s637_s30, %s430_s26 }
  0x26   : > { %p427_p4 = pnand %p425_p2, %p411_p3  ;;  %p433_p5 = scmp.lt.s32.totalorder %s431_s27, %s424_s17 }
  0x28   : > { %p428_p12 = pneg %p427_p4  ;;  %p434_p8 = por %p433_p5, %p432_p11 }
  0x2a   : > { %p435_p9 = pnand %p434_p8, %p428_p12 }
  0x2c   : > { %438 = shalt.err (!%p435_p9)
}
  0x2d   : > { %359 = dma.hbm_to_vmem [thread:$0]  (!%p633_p13), %s627_s28, 128, %s637_s30, %s118_s4  }
  0x2e   : > { %p784_p0 = scmp.lt.s32.totalorder %s539_s12, 3  ;;  %p785_p1 = scmp.ge.s32.totalorder %s539_s12, 1 }
  0x2f   : > { %s680_s7 = scalar_lea.hbm %s775_s1, %s341_s24  ;;  %s139_s8 = scalar_lea.vmem [#allocation5], %s340_s25 }
  0x30   : > { %p671_p7 = pnand %p785_p1, %p784_p0  ;;  %s146_s14 = sshll.u32 %s139_s8, 4  ;;  %s147_s14 = int_to_ptr.vmem [resolvable:$true] %s146_s14 }
  0x31   : > { %s136_s28 = scalar_lea.sflag [#allocation6], %s618_s23  ;;  %s439_s30 = scalar_lea.hbm %s680_s7, 128 }
  0x32   : > { %s786_s29 = scalar_select %p671_p7, 1, 0 }
  0x33   : > { %p440_p11 = scmp.ne.s32.totalorder %s680_s7, %s439_s30  ;;  %s444_s24 = scalar_lea.hbm %s775_s1, 256 }
  0x34   : > { %p445_p2 = scmp.lt.u32.totalorder %s680_s7, %s775_s1  ;;  %p446_p4 = scmp.lt.u32.totalorder %s444_s24, %s439_s30 }
  0x35   : > { %p442_p12 = pnand %p440_p11, %p411_p3  ;;  %p448_p8 = scmp.lt.u32.totalorder %s439_s30, %s680_s7 }
  0x36   : > { %p447_p5 = por %p446_p4, %p445_p2 }
  0x37   : > { %p443_p10 = pneg %p442_p12 }
  0x38   : > { %p449_p9 = por %p448_p8, %p447_p5 }
  0x3a   : > { %p450_p0 = pnand %p449_p9, %p443_p10 }
  0x3c   : > { %453 = shalt.err (!%p450_p0)
}
  0x3d   : > { %s454_s23 = scalar_lea.vmem %s147_s14, 128  ;;  %s542_s25 = smov [#allocation5]  }
  0x3e   : > { %p455_p1 = scmp.ne.s32.totalorder %s147_s14, %s454_s23  ;;  %s459_s26 = sshll.u32 %s542_s25, 4  ;;  %s460_s26 = int_to_ptr.vmem [resolvable:$false] %s459_s26 }
  0x3f   : > { %s461_s27 = scalar_lea.vmem %s460_s26, 256  ;;  %p462_p6 = scmp.lt.s32.totalorder %s147_s14, %s460_s26 }
  0x40   : > { %p457_p11 = pnand %p455_p1, %p411_p3  ;;  %p463_p7 = scmp.lt.s32.totalorder %s461_s27, %s454_s23 }
  0x42   : > { %p458_p12 = pneg %p457_p11  ;;  %p464_p2 = por %p463_p7, %p462_p6 }
  0x44   : > { %p465_p4 = pnand %p464_p2, %p458_p12 }
  0x46   : > { %468 = shalt.err (!%p465_p4)
}
  0x47   : > { %362 = dma.hbm_to_vmem [thread:$0]  (!%p633_p13), %s680_s7, 128, %s147_s14, %s136_s28  }
  0x48   : > { %p787_p10 = scmp.ne.s32.totalorder %s786_s29, 0 }
  0x49   : > { %s707_s5 = sand.u32 (!%p787_p10), 1, %s531_s10   ;;  %p788_p3 = scmp.ne.s32.totalorder (!%p787_p10), %s780_s20, 0 }
  0x4a   : > { %155 = sbr.rel (%p787_p10) target bundleno = 445 (0x1bd), region = 28  ;;  %s345_s6 = sshll.u32 (!%p787_p10), %s707_s5, 3 }
  0x4b   : > { %s158_s8 = scalar_lea.sflag (!%p787_p10), [#allocation3], %s707_s5  ;;  %s161_s30 = scalar_lea.vmem (!%p787_p10), [#allocation2], %s345_s6 }
  0x51   : > { %514 = dma.done.wait (%p788_p3), %s158_s8, 128  }
  0x52   : > { %516 = vsyncadd (%p788_p3), %s158_s8, 4294967168  ;;  %s167_s3 = scalar_lea.sflag [#allocation6], %s707_s5  ;;  %s170_s7 = scalar_lea.vmem [#allocation5], %s345_s6 }
  0x53   : > { %518 = dma.done.wait (%p788_p3), %s167_s3, 128  }
  0x54   : > { %520 = vsyncadd (%p788_p3), %s167_s3, 4294967168  ;;  %v197_v0 = vld [vmem:[%s170_s7] sm:$0xff]  ;;  %vm199_vm0 = vcmask 261120   ;;  %v195_v1 = vld [vmem:[%s161_s30] sm:$0xff]  ;;  %s347_s20 = sshll.u32 %s580_s13, 4  ;;  %s194_s29 = scalar_lea.vmem [#allocation7], %s707_s5 }
  0x55   : > { %v198_v2 = vmul.f32 0.25, %v197_v0  ;;  %v196_v3 = vmul.f32 0.25, %v195_v1  ;;  %s248_s14 = sshll.u32 %s194_s29, 4  ;;  %vm233_vm1 = vcmask 253952   ;;  %s730_s16 = scalar_lea.hbm %s776_s2, %s347_s20  ;;  %s732_s14 = int_to_ptr.vmem [resolvable:$true] %s248_s14 }
  0x56   : > { %s236_s24 = scalar_lea.sflag [#allocation4], %s707_s5  ;;  %s469_s17 = scalar_lea.vmem %s732_s14, 16 }
  0x57   : > { %v204_v4 = vsel %vm199_vm0, %v198_v2, -inf  ;;  %v200_v5 = vsel %vm199_vm0, %v196_v3, -inf  ;;  %p470_p6 = scmp.ne.s32.totalorder %s732_s14, %s469_s17  ;;  %p789_p13 = scmp.ne.s32.totalorder %s781_s21, 0 }
  0x58   : > { %205 = vmax.xlane.f32.xlu0 %v204_v4  ;;  %s543_s13 = smov [#allocation7]  }
  0x59   : > { %p471_p7 = pnand %p470_p6, %p789_p13  ;;  %s473_s19 = sshll.u32 %s543_s13, 4  ;;  %s474_s19 = int_to_ptr.vmem [resolvable:$false] %s473_s19 }
  0x5a   : > { %s475_s23 = scalar_lea.vmem %s474_s19, 32  ;;  %p476_p8 = scmp.lt.s32.totalorder %s732_s14, %s474_s19 }
  0x5b   : > { %p472_p5 = pneg %p471_p7  ;;  %p477_p9 = scmp.lt.s32.totalorder %s475_s23, %s469_s17 }
  0x5c   : > { %201 = vmax.xlane.f32.xlu0 %v200_v5 }
  0x5d   : > { %p478_p0 = por %p477_p9, %p476_p8 }
  0x5f   : > { %p479_p1 = pnand %p478_p0, %p472_p5 }
  0xe5   : > { %v206_v6 = vpop.xlane.xlu0 %205 }
  0xe6   : > { %v207_v7 = vsub.f32 %v198_v2, %v206_v6 }
  0xe8   : > { %v210_v8 = vmul.f32 1.442695, %v207_v7 }
  0xe9   : > { %v202_v9 = vpop.xlane.xlu0 %201 }
  0xea   : > { %401 = vpow2.f32 %v210_v8  ;;  %v203_v10 = vsub.f32 %v196_v3, %v202_v9 }
  0xec   : > { %v208_v11 = vmul.f32 1.442695, %v203_v10  ;;  %v223_v12 = vsub.f32 %v207_v7, %v203_v10 }
  0xee   : > { %403 = vpow2.f32 %v208_v11 }
  0xf4   : > { %v402_v13 = vpop.eup %401 }
  0xf5   : > { %v215_v14 = vsel %vm199_vm0, %v402_v13, 0.0 }
  0xf6   : > { %216 = vadd.xlane.f32.xlu1 %v215_v14 }
  0xf8   : > { %v404_v15 = vpop.eup %403 }
  0xf9   : > { %v212_v16 = vsel %vm199_vm0, %v404_v15, 0.0 }
  0xfa   : > { %213 = vadd.xlane.f32.xlu1 %v212_v16 }
 0x183   : > { %v217_v17 = vpop.xlane.xlu1 %216 }
 0x184   : > { %405 = vrcp.f32 %v217_v17 }
 0x187   : > { %v214_v18 = vpop.xlane.xlu1 %213 }
 0x18e   : > { %v406_v19 = vpop.eup %405 }
 0x18f   : > { %v220_v20 = vmul.f32 %v406_v19, %v214_v18  ;;  %v219_v23 = vmul.f32 %v406_v19, %v402_v13 }
 0x191   : > { %407 = vlog2.f32 %v220_v20 }
 0x19b   : > { %v408_v21 = vpop.eup %407 }
 0x19c   : > { %v222_v22 = vmul.f32 0.6931472, %v408_v21 }
 0x19e   : > { %v224_v24 = vadd.f32 %v223_v12, %v222_v22 }
 0x1a0   : > { %v225_v25 = vmul.f32 %v224_v24, %v219_v23 }
 0x1a2   : > { %v226_v26 = vsel %vm199_vm0, %v225_v25, 0.0 }
 0x1a3   : > { %v227_v27 = vrot.slane %v226_v26, 4 }
 0x1a5   : > { %v228_v28 = vadd.f32 %v227_v27, %v226_v26 }
 0x1a7   : > { %v229_v29 = vrot.slane %v228_v28, 2 }
 0x1a9   : > { %v230_v30 = vadd.f32 %v229_v29, %v228_v28 }
 0x1ab   : > { %v231_v31 = vrot.slane %v230_v30, 1 }
 0x1ad   : > { %v232_v32 = vadd.f32 %v231_v31, %v230_v30 }
 0x1af   : > { %234 = vst.msk [vmem:[%s194_s29] sm:$0x1] %vm233_vm1, %v232_v32 }
 0x1b0   : > { %482 = shalt.err (!%p479_p1)
}
 0x1b1   : > { %s483_s25 = scalar_lea.hbm %s730_s16, 16  ;;  %s487_s5 = scalar_lea.hbm %s776_s2, 32 }
 0x1b2   : > { %p484_p11 = scmp.ne.s32.totalorder %s730_s16, %s483_s25  ;;  %p488_p4 = scmp.lt.u32.totalorder %s730_s16, %s776_s2 }
 0x1b3   : > { %p489_p10 = scmp.lt.u32.totalorder %s487_s5, %s483_s25  ;;  %p491_p6 = scmp.lt.u32.totalorder %s483_s25, %s730_s16 }
 0x1b4   : > { %p485_p12 = pnand %p484_p11, %p789_p13 }
 0x1b5   : > { %p490_p3 = por %p489_p10, %p488_p4 }
 0x1b6   : > { %p486_p2 = pneg %p485_p12 }
 0x1b7   : > { %p492_p7 = por %p491_p6, %p490_p3 }
 0x1b9   : > { %p493_p5 = pnand %p492_p7, %p486_p2 }
 0x1bb   : > { %496 = shalt.err (!%p493_p5)
}
 0x1bc   : > { %354 = dma.vmem_to_hbm [thread:$0]  (%p789_p13), %s732_s14, 16, %s730_s16, %s236_s24  }
 0x1bd PF: > { %s260_s30 = sand.u32 1, %s527_s9   ;;  %p790_p8 = scmp.ne.s32.totalorder %s782_s22, 0 }
 0x1be   : > { %p791_p9 = scmp.ge.s32.totalorder %s539_s12, 2  ;;  %s261_s3 = scalar_lea.sflag [#allocation4], %s260_s30 }
 0x1c0   : > { %p364_p0 = pnand %p791_p9, %p790_p8 }
 0x1c2   : > { %522 = dma.done.wait (!%p364_p0), %s261_s3, 16  }
 0x1c3   : > { %524 = vsyncadd (!%p364_p0), %s261_s3, 4294967280  ;;  %p18_p1 = scmp.ge.s32.totalorder %s584_s15, 4   ;;  %s792_s9 = smov %s531_s10 }
 0x1c4   : > { %s793_s10 = smov %s535_s11  ;;  %s794_s11 = smov %s596_s18 }
 0x1c5   : > { %s795_s12 = smov %s584_s15  ;;  %20 = sbr.rel (!%p18_p1) target bundleno = 7 (0x7), region = 86 }
 0x1cc   :  { %265 = vsyncpa [#allocation3], 1 }
 0x1cd   :  { %267 = vsyncpa [#allocation3 + $0x1], 1 }
 0x1ce   :  { %268 = vsyncpa [#allocation6], 1 }
 0x1cf   :  { %270 = vsyncpa [#allocation6 + $0x1], 1 }
 0x1d0   :  { %271 = vsyncpa [#allocation4], 1 }
 0x1d1   :  { %273 = vsyncpa [#allocation4 + $0x1], 1 }

</bundles_post_ra>
